<compile_context>
chip_gen: v5e
topology: v5e:2x2
jax: 0.10.0
libtpu: 0.0.40
codegen_flags: <defaults>
</compile_context>

<pallas_src>
import functools

import jax
import jax.numpy as jnp
from jax import lax
from jax.experimental import pallas as pl
from jax.experimental.pallas import tpu as pltpu


# ---------------------------------------------------------------------------
# Shared gate math (f32, gate order f|u|c|o along the 4H lane axis)
# ---------------------------------------------------------------------------
def _gate_combine(z, c_prev):
    """z: (B, 4H) pre-activation -> new (c, h)."""
    H = c_prev.shape[-1]
    g = jax.nn.sigmoid(z)            # one full-vreg sigmoid (f, u, _, o lanes)
    tz = jnp.tanh(z)                 # one full-vreg tanh (c-gate lanes used below)
    c = g[:, 0:H] * c_prev + g[:, H:2 * H] * tz[:, 2 * H:3 * H]
    h = g[:, 3 * H:4 * H] * jnp.tanh(c)
    return c, h


# ---------------------------------------------------------------------------
# Kernel 1: standalone single step (matches module.forward; state updated in place)
# ---------------------------------------------------------------------------
def lstm_cell_kernel(c_ref, h_ref, x_ref, wx_ref, wh_ref, bg_ref, wy_ref, by_ref,
                     c_out_ref, h_out_ref, y_out_ref):
    z = (jnp.dot(x_ref[...], wx_ref[...], preferred_element_type=jnp.float32)
         + jnp.dot(h_ref[...], wh_ref[...], preferred_element_type=jnp.float32)
         + bg_ref[...])                                   # (B, 4H) lane-dense
    c, h = _gate_combine(z, c_ref[...])
    y = jnp.dot(h, wy_ref[...], preferred_element_type=jnp.float32) + by_ref[...]
    c_out_ref[...] = c.astype(c_out_ref.dtype)
    h_out_ref[...] = h.astype(h_out_ref.dtype)
    y_out_ref[...] = y.astype(y_out_ref.dtype)


@functools.partial(jax.jit, static_argnames=("out_size",))
def lstm_forward(c_prev, h_prev, x, prepped, *, out_size):
    """One LSTM step. `prepped` comes from prep_params (no per-step layout work)."""
    B, H = c_prev.shape
    o_pad = prepped["by"].shape[1]
    vmem = functools.partial(pl.BlockSpec, memory_space=pltpu.MemorySpace.VMEM)

    c, h, y = pl.pallas_call(
        lstm_cell_kernel,
        out_shape=(
            jax.ShapeDtypeStruct((B, H), jnp.float32),
            jax.ShapeDtypeStruct((B, H), jnp.float32),
            jax.ShapeDtypeStruct((B, o_pad), jnp.float32),
        ),
        in_specs=[vmem()] * 8,
        out_specs=(vmem(), vmem(), vmem()),
        input_output_aliases={0: 0, 1: 1},   # c_prev -> c, h_prev -> h (in place)
    )(c_prev, h_prev, x, prepped["wx"], prepped["wh"], prepped["bg"],
      prepped["wy"], prepped["by"])
    return c, h, y[:, :out_size]


# ---------------------------------------------------------------------------
# Kernel 2: whole sequence in ONE invocation (no grid, unrolled in-kernel loop)
# ---------------------------------------------------------------------------
def lstm_seq_kernel(zx_ref, c0_ref, h0_ref, whf_ref, by_ref,
                    y_ref, c_out_ref, h_out_ref):
    T, B, G = zx_ref.shape                     # G = 4H
    o_pad = by_ref.shape[1]

    whf = whf_ref[...]                                   # (H, G+o_pad) fused [Wh | Wy]
    by = pl.broadcast_to(by_ref[...], (B, o_pad))        # hoisted broadcast

    # Step 0 (prologue): fused dot with h0; its y lanes (h0 @ Wy) are discarded.
    zy = jnp.dot(h0_ref[...], whf, preferred_element_type=jnp.float32)
    c, h = _gate_combine(zx_ref[0] + zy[:, :G], c0_ref[...])

    # Steps 1..T-1: ONE fused MXU dot per step; y lags the recurrence by one step.
    def body(t, carry):
        c_prev, h_prev = carry
        zy = jnp.dot(h_prev, whf, preferred_element_type=jnp.float32)   # (B, G+o_pad)
        y_ref[t - 1] = (zy[:, G:] + by).astype(y_ref.dtype)             # y_{t-1}
        return _gate_combine(zx_ref[t] + zy[:, :G], c_prev)

    c, h = lax.fori_loop(1, T, body, (c, h), unroll=True)

    # Epilogue: y for the final step, then state writeback.
    zy = jnp.dot(h, whf, preferred_element_type=jnp.float32)
    y_ref[T - 1] = (zy[:, G:] + by).astype(y_ref.dtype)
    c_out_ref[...] = c.astype(c_out_ref.dtype)
    h_out_ref[...] = h.astype(h_out_ref.dtype)


@functools.partial(jax.jit, static_argnames=("out_size",))
def lstm_sequence(c0, h0, xs, prepped, *, out_size):
    """Run T LSTM steps inside a single pallas_call; everything stays VMEM-resident."""
    T, B, I = xs.shape
    H = c0.shape[1]
    G = prepped["wx"].shape[1]            # 4H
    o_pad = prepped["by"].shape[1]

    # Hoisted input projection (+ gate bias fold): one (T*B, I)@(I, 4H) matmul at M=T*B,
    # off the serial recurrence path.  HIGHEST precision keeps full-f32 accuracy.
    zx = (jnp.dot(xs.reshape(T * B, I), prepped["wx"],
                  preferred_element_type=jnp.float32,
                  precision=jax.lax.Precision.HIGHEST)
          + prepped["bg"]).reshape(T, B, G)

    vmem = functools.partial(pl.BlockSpec, memory_space=pltpu.MemorySpace.VMEM)
    ys, c, h = pl.pallas_call(
        lstm_seq_kernel,
        out_shape=(
            jax.ShapeDtypeStruct((T, B, o_pad), jnp.float32),   # lane-dense y slab
            jax.ShapeDtypeStruct((B, H), jnp.float32),
            jax.ShapeDtypeStruct((B, H), jnp.float32),
        ),
        in_specs=[vmem()] * 5,
        out_specs=(vmem(), vmem(), vmem()),
    )(zx, c0, h0, prepped["whf"], prepped["by"])
    return ys[..., :out_size], c, h


# ---------------------------------------------------------------------------
# One-time parameter preparation (all layout work hoisted out of the step)
# ---------------------------------------------------------------------------
def prep_params(params, input_size, lane=128):
    """Convert torch nn.Linear-layout params to the kernel layout, once."""
    I = input_size
    names = ("f", "u", "c", "o")
    wg = jnp.concatenate([params[f"W_{n}"].T for n in names], axis=1)   # (I+H, 4H)
    bg = jnp.concatenate([params[f"b_{n}"] for n in names])[None, :]    # (1, 4H)
    wy = params["W_y"].T                                                # (H, O)
    by = params["b_y"][None, :]                                         # (1, O)
    out_size = int(wy.shape[1])
    o_pad = -(-out_size // lane) * lane
    wy = jnp.pad(wy, ((0, 0), (0, o_pad - out_size)))                   # lane-dense
    by = jnp.pad(by, ((0, 0), (0, o_pad - out_size)))
    wx, wh = wg[:I], wg[I:]
    whf = jnp.concatenate([wh, wy], axis=1)        # (H, 4H + o_pad) fused [Wh | Wy]
    prepped = dict(wx=wx, wh=wh, bg=bg, wy=wy, by=by, whf=whf)
    prepped = jax.device_put(jax.tree_util.tree_map(jnp.asarray, prepped))
    return prepped, out_size


# ---------------------------------------------------------------------------
# Pure-JAX reference (mirrors the PyTorch module exactly, torch-layout params)
# ---------------------------------------------------------------------------
def lstm_forward_ref(c_prev, h_prev, x, params):
    combined = jnp.concatenate([x, h_prev], axis=1)
    lin = lambda W, b: combined @ W.T + b
    f = jax.nn.sigmoid(lin(params["W_f"], params["b_f"]))
    u = jax.nn.sigmoid(lin(params["W_u"], params["b_u"]))
    c_tilde = jnp.tanh(lin(params["W_c"], params["b_c"]))
    c = f * c_prev + u * c_tilde
    o = jax.nn.sigmoid(lin(params["W_o"], params["b_o"]))
    h = o * jnp.tanh(c)
    y = h @ params["W_y"].T + params["b_y"]
    return c, h, y


def init_params(key, input_size, hidden_size, output_size):
    """Deterministic init matching nn.Linear shapes (uniform +-1/sqrt(fan_in))."""
    params = {}
    fan_in = input_size + hidden_size
    bound = 1.0 / jnp.sqrt(fan_in)
    for name in ("f", "u", "c", "o"):
        key, k1, k2 = jax.random.split(key, 3)
        params[f"W_{name}"] = jax.random.uniform(
            k1, (hidden_size, fan_in), jnp.float32, -bound, bound)
        params[f"b_{name}"] = jax.random.uniform(
            k2, (hidden_size,), jnp.float32, -bound, bound)
    bound_y = 1.0 / jnp.sqrt(hidden_size)
    key, k1, k2 = jax.random.split(key, 3)
    params["W_y"] = jax.random.uniform(
        k1, (output_size, hidden_size), jnp.float32, -bound_y, bound_y)
    params["b_y"] = jax.random.uniform(
        k2, (output_size,), jnp.float32, -bound_y, bound_y)
    return params


if __name__ == "__main__":
    batch = 8
    input_size = 27      # character one-hot vocab (dinosaur names)
    hidden_size = 32     # 4H = 128 -> gate pre-activation is one lane-dense vreg
    output_size = 27
    seq_len = 12

    key = jax.random.PRNGKey(0)
    key, kp, kx, kh, kc, ks = jax.random.split(key, 6)
    params = init_params(kp, input_size, hidden_size, output_size)
    prepped, out_size = prep_params(params, input_size)   # one-time layout work

    x = jax.random.normal(kx, (batch, input_size), jnp.float32)
    h0 = jax.random.normal(kh, (batch, hidden_size), jnp.float32)
    c0 = jax.random.normal(kc, (batch, hidden_size), jnp.float32)
    xs = jax.random.normal(ks, (seq_len, batch, input_size), jnp.float32)

    # --- single step (matches module.forward exactly) ---
    c, h, y = lstm_forward(c0, h0, x, prepped, out_size=out_size)
    jax.block_until_ready((c, h, y))
    c_r, h_r, y_r = lstm_forward_ref(c0, h0, x, params)
    assert jnp.allclose(c, c_r, atol=1e-5, rtol=1e-5)
    assert jnp.allclose(h, h_r, atol=1e-5, rtol=1e-5)
    assert jnp.allclose(y, y_r, atol=1e-5, rtol=1e-5)

    # --- full sequence, single pallas_call (time loop fully internalized) ---
    ys, cT, hT = lstm_sequence(c0, h0, xs, prepped, out_size=out_size)
    jax.block_until_ready((ys, cT, hT))

    def ref_step(carry, x_t):
        c_p, h_p = carry
        c_n, h_n, y_n = lstm_forward_ref(c_p, h_p, x_t, params)
        return (c_n, h_n), y_n

    (cT_r, hT_r), ys_r = jax.lax.scan(ref_step, (c0, h0), xs)
    assert jnp.allclose(cT, cT_r, atol=1e-5, rtol=1e-5)
    assert jnp.allclose(hT, hT_r, atol=1e-5, rtol=1e-5)
    assert jnp.allclose(ys, ys_r, atol=1e-5, rtol=1e-5)

    print("KERNEL_OK")
</pallas_src>

<mosaic_0001>
module attributes {stable_mosaic.version = 11 : i64} {
  func.func @lstm_cell_kernel(%arg0: memref<8x32xf32, #tpu.memory_space<vmem>>, %arg1: memref<8x32xf32, #tpu.memory_space<vmem>>, %arg2: memref<8x27xf32, #tpu.memory_space<vmem>>, %arg3: memref<27x128xf32, #tpu.memory_space<vmem>>, %arg4: memref<32x128xf32, #tpu.memory_space<vmem>>, %arg5: memref<1x128xf32, #tpu.memory_space<vmem>>, %arg6: memref<32x128xf32, #tpu.memory_space<vmem>>, %arg7: memref<1x128xf32, #tpu.memory_space<vmem>>, %arg8: memref<8x32xf32, #tpu.memory_space<vmem>>, %arg9: memref<8x32xf32, #tpu.memory_space<vmem>>, %arg10: memref<8x128xf32, #tpu.memory_space<vmem>>) attributes {dimension_semantics = [], scalar_prefetch = 0 : i64, scratch_operands = 0 : i64, tpu.core_type = #tpu.core_type<tc>} {
    %c0 = arith.constant 0 : index
    %c0_0 = arith.constant 0 : index
    %0 = vector.load %arg2[%c0, %c0_0] : memref<8x27xf32, #tpu.memory_space<vmem>>, vector<8x27xf32>
    %c0_1 = arith.constant 0 : index
    %c0_2 = arith.constant 0 : index
    %1 = vector.load %arg3[%c0_1, %c0_2] : memref<27x128xf32, #tpu.memory_space<vmem>>, vector<27x128xf32>
    %cst = arith.constant dense<0.000000e+00> : vector<8x128xf32>
    %2 = tpu.matmul %0, %1, %cst {dimension_numbers = #tpu.dot_dimension_numbers<[1], [0], [0], [1], [0, 0, 1, 1], [], []>} : vector<8x27xf32>, vector<27x128xf32>, vector<8x128xf32> -> vector<8x128xf32>
    %c0_3 = arith.constant 0 : index
    %c0_4 = arith.constant 0 : index
    %3 = vector.load %arg1[%c0_3, %c0_4] : memref<8x32xf32, #tpu.memory_space<vmem>>, vector<8x32xf32>
    %c0_5 = arith.constant 0 : index
    %c0_6 = arith.constant 0 : index
    %4 = vector.load %arg4[%c0_5, %c0_6] : memref<32x128xf32, #tpu.memory_space<vmem>>, vector<32x128xf32>
    %cst_7 = arith.constant dense<0.000000e+00> : vector<8x128xf32>
    %5 = tpu.matmul %3, %4, %cst_7 {dimension_numbers = #tpu.dot_dimension_numbers<[1], [0], [0], [1], [0, 0, 1, 1], [], []>} : vector<8x32xf32>, vector<32x128xf32>, vector<8x128xf32> -> vector<8x128xf32>
    %6 = arith.addf %2, %5 : vector<8x128xf32>
    %c0_8 = arith.constant 0 : index
    %c0_9 = arith.constant 0 : index
    %7 = vector.load %arg5[%c0_8, %c0_9] : memref<1x128xf32, #tpu.memory_space<vmem>>, vector<1x128xf32>
    %8 = vector.broadcast %7 : vector<1x128xf32> to vector<8x128xf32>
    %9 = arith.addf %6, %8 : vector<8x128xf32>
    %c0_10 = arith.constant 0 : index
    %c0_11 = arith.constant 0 : index
    %10 = vector.load %arg0[%c0_10, %c0_11] : memref<8x32xf32, #tpu.memory_space<vmem>>, vector<8x32xf32>
    %11 = arith.negf %9 : vector<8x128xf32>
    %12 = math.exp %11 : vector<8x128xf32>
    %cst_12 = arith.constant 1.000000e+00 : f32
    %13 = vector.broadcast %cst_12 : f32 to vector<8x128xf32>
    %14 = arith.addf %13, %12 : vector<8x128xf32>
    %15 = arith.divf %13, %14 : vector<8x128xf32>
    %16 = math.tanh %9 : vector<8x128xf32>
    %17 = vector.extract_strided_slice %15 {offsets = [0, 0], sizes = [8, 32], strides = [1, 1]} : vector<8x128xf32> to vector<8x32xf32>
    %18 = arith.mulf %17, %10 : vector<8x32xf32>
    %19 = vector.extract_strided_slice %15 {offsets = [0, 32], sizes = [8, 32], strides = [1, 1]} : vector<8x128xf32> to vector<8x32xf32>
    %20 = vector.extract_strided_slice %16 {offsets = [0, 64], sizes = [8, 32], strides = [1, 1]} : vector<8x128xf32> to vector<8x32xf32>
    %21 = arith.mulf %19, %20 : vector<8x32xf32>
    %22 = arith.addf %18, %21 : vector<8x32xf32>
    %23 = vector.extract_strided_slice %15 {offsets = [0, 96], sizes = [8, 32], strides = [1, 1]} : vector<8x128xf32> to vector<8x32xf32>
    %24 = math.tanh %22 : vector<8x32xf32>
    %25 = arith.mulf %23, %24 : vector<8x32xf32>
    %c0_13 = arith.constant 0 : index
    %c0_14 = arith.constant 0 : index
    %26 = vector.load %arg6[%c0_13, %c0_14] : memref<32x128xf32, #tpu.memory_space<vmem>>, vector<32x128xf32>
    %cst_15 = arith.constant dense<0.000000e+00> : vector<8x128xf32>
    %27 = tpu.matmul %25, %26, %cst_15 {dimension_numbers = #tpu.dot_dimension_numbers<[1], [0], [0], [1], [0, 0, 1, 1], [], []>} : vector<8x32xf32>, vector<32x128xf32>, vector<8x128xf32> -> vector<8x128xf32>
    %c0_16 = arith.constant 0 : index
    %c0_17 = arith.constant 0 : index
    %28 = vector.load %arg7[%c0_16, %c0_17] : memref<1x128xf32, #tpu.memory_space<vmem>>, vector<1x128xf32>
    %29 = vector.broadcast %28 : vector<1x128xf32> to vector<8x128xf32>
    %30 = arith.addf %27, %29 : vector<8x128xf32>
    %c0_18 = arith.constant 0 : index
    %c0_19 = arith.constant 0 : index
    %31 = vector.load %arg8[%c0_18, %c0_19] : memref<8x32xf32, #tpu.memory_space<vmem>>, vector<8x32xf32>
    tpu.vector_store %arg8[%c0_18, %c0_19], %22 {strides = array<i32>} : memref<8x32xf32, #tpu.memory_space<vmem>>, vector<8x32xf32>,
    %c0_20 = arith.constant 0 : index
    %c0_21 = arith.constant 0 : index
    %32 = vector.load %arg9[%c0_20, %c0_21] : memref<8x32xf32, #tpu.memory_space<vmem>>, vector<8x32xf32>
    tpu.vector_store %arg9[%c0_20, %c0_21], %25 {strides = array<i32>} : memref<8x32xf32, #tpu.memory_space<vmem>>, vector<8x32xf32>,
    %c0_22 = arith.constant 0 : index
    %c0_23 = arith.constant 0 : index
    %33 = vector.load %arg10[%c0_22, %c0_23] : memref<8x128xf32, #tpu.memory_space<vmem>>, vector<8x128xf32>
    tpu.vector_store %arg10[%c0_22, %c0_23], %30 {strides = array<i32>} : memref<8x128xf32, #tpu.memory_space<vmem>>, vector<8x128xf32>,
    return
  }
}

</mosaic_0001>

<bundles_post_ra>
// kernel: lstm_forward.1
= control target key start
LH: loop header
LB: loop body
LE: loop exit
PB: predicated region body
PF: predicated region fallthrough
CT: control target
= control target key end

     0   :  { %16 = vsyncpa [#allocation3], 0  ;;  %s476_s0 = inlined_call_operand.vmem [shape: f32[8,32], index: 0, kind: input, shape index: {}, may-alias: {0,8}]   ;;  %s477_s1 = inlined_call_operand.vmem [shape: f32[8,32], index: 1, kind: input, shape index: {}, may-alias: {1,9}]   ;;  %s478_s2 = inlined_call_operand.vmem [shape: f32[8,27], index: 2, kind: input, shape index: {}]   ;;  %s479_s3 = inlined_call_operand.hbm [shape: f32[27,128], index: 3, kind: input, shape index: {}]   ;;  %s480_s4 = inlined_call_operand.hbm [shape: f32[32,128], index: 4, kind: input, shape index: {}]   ;;  %s481_s5 = inlined_call_operand.vmem [shape: f32[1,128], index: 5, kind: input, shape index: {}]   ;;  %s482_s6 = inlined_call_operand.hbm [shape: f32[32,128], index: 6, kind: input, shape index: {}]   ;;  %s483_s7 = inlined_call_operand.vmem [shape: f32[1,128], index: 7, kind: input, shape index: {}]   ;;  %s484_s8 = inlined_call_operand.vmem [shape: f32[8,32], index: 8, kind: output, shape index: {0}, may-alias: {0,8}]   ;;  %s485_s9 = inlined_call_operand.vmem [shape: f32[8,32], index: 9, kind: output, shape index: {1}, may-alias: {1,9}]   ;;  %s486_s10 = inlined_call_operand.hbm [shape: f32[8,128], index: 10, kind: output, shape index: {2}]  }
   0x1   :  { %17 = vsyncpa [#allocation6], 0 }
   0x2   :  { %18 = vsyncpa [#allocation4], 0  ;;  %s42_s15 = sshll.u32 %s480_s4, 4  ;;  %s373_s16 = smov [#allocation5]   ;;  %s43_s15 = int_to_ptr.hbm [resolvable:$true] %s42_s15 }
   0x3   :  { %s44_s17 = sshll.u32 %s373_s16, 4  ;;  %s29_s20 = sshll.u32 %s479_s3, 4  ;;  %s45_s17 = int_to_ptr.vmem [resolvable:$true] %s44_s17  ;;  %s30_s20 = int_to_ptr.hbm [resolvable:$true] %s29_s20 }
   0x4   :  { %s374_s21 = smov 128   ;;  %s375_s22 = smov 8  }
   0x5   :  { %50 = dma.hbm_to_vmem [thread:$0]  %s43_s15, 512, %s45_s17, [#allocation6], %s374_s21, %s374_s21, %s375_s22  }
   0x6   :  { %s376_s23 = smov [#allocation2]   ;;  %s57_s27 = sshll.u32 %s482_s6, 4  ;;  %s58_s27 = int_to_ptr.hbm [resolvable:$true] %s57_s27 }
   0x7   :  { %s31_s24 = sshll.u32 %s376_s23, 4  ;;  %s377_s4 = smov [#allocation7]   ;;  %s32_s24 = int_to_ptr.vmem [resolvable:$true] %s31_s24 }
   0x8   :  { %37 = dma.hbm_to_vmem [thread:$0]  %s30_s20, 512, %s32_s24, [#allocation3], %s374_s21, %s374_s21, %s375_s22  }
   0x9   :  { %s59_s28 = sshll.u32 %s377_s4, 4  ;;  %s60_s28 = int_to_ptr.vmem [resolvable:$true] %s59_s28 }
   0xa   :  { %65 = dma.hbm_to_vmem [thread:$0]  %s58_s27, 512, %s60_s28, [#allocation6], %s374_s21, %s374_s21, %s375_s22  }
   0xb   :  { %367 = dma.done.wait [#allocation3], 512  }
   0xc   :  { %368 = vsyncadd [#allocation3], 4294966784 }
   0xd   :  { %369 = dma.done.wait [#allocation6], 1024  }
   0xe   :  { %370 = vsyncadd [#allocation6], 4294966272  ;;  %vm118_vm0 = vcmask 1042432   ;;  %v89_v0 = vld [vmem:[#allocation5 + $0x18] sm:$0xff]  ;;  %v88_v2 = vld [vmem:[#allocation5 + $0x10] sm:$0xff]  ;;  %vm90_vm1 = vcmask 261120  }
   0xf   :  { %v84_v1 = vld [vmem:[#allocation2 + $0x18] sm:$0x7]  ;;  %106 = vmatpush.msra.mxu0 %v89_v0  ;;  %v83_v3 = vld [vmem:[#allocation2 + $0x10] sm:$0xff]  ;;  %v87_v4 = vld [vmem:[#allocation5 + $0x8] sm:$0xff]  ;;  %vm114_vm2 = vcmask 220160   ;;  %s380_s18 = smov [#allocation8]  }
  0x10   :  { %249 = vmatpush.msk.msra.mxu1 %vm118_vm0, %v84_v1  ;;  %v82_v5 = vld [vmem:[#allocation2 + $0x8] sm:$0xff]  ;;  %v86_v6 = vld [vmem:[#allocation5] sm:$0xff]  ;;  %v188_v36 = vld [vmem:[#allocation7 + $0x18] sm:$0xff]  ;;  %s231_s19 = sshll.u32 %s380_s18, 4  ;;  %s233_s22 = sshll.u32 %s486_s10, 4  ;;  %s232_s19 = int_to_ptr.vmem [resolvable:$true] %s231_s19  ;;  %s234_s22 = int_to_ptr.hbm [resolvable:$true] %s233_s22 }
  0x11   :  { %107 = vmatpush.msra.mxu0 %v88_v2  ;;  %v81_v7 = vld [vmem:[#allocation2] sm:$0xff]  ;;  %v187_v37 = vld [vmem:[#allocation7 + $0x10] sm:$0xff]  ;;  %210 = vmatpush.msra.mxu2 %v188_v36  ;;  %v186_v38 = vld [vmem:[#allocation7 + $0x8] sm:$0xff] }
  0x12   :  { %135 = vmatpush.msra.mxu1 %v83_v3  ;;  %v85_v8 = vld [vmem:[%s477_s1] sm:$0xff]  ;;  %s378_s1 = smov 96  }
  0x13   :  { %108 = vmatpush.msra.mxu0 %v87_v4  ;;  %v80_v9 = vld [vmem:[%s478_s2] sm:$0xff]  ;;  %211 = vmatpush.msra.mxu2 %v187_v37 }
  0x14   :  { %136 = vmatpush.msra.mxu1 %v82_v5  ;;  %v261_v10 = vld [vmem:[%s481_s5] ss:$0 sm:$0xff] }
  0x15   :  { %109 = vmatpush.msra.mxu0 %v86_v6  ;;  %v147_v31 = vld [vmem:[%s476_s0] sm:$0xff]  ;;  %212 = vmatpush.msra.mxu2 %v186_v38  ;;  %s379_s0 = smov 32  }
  0x16   :  { %137 = vmatpush.msra.mxu1 %v81_v7  ;;  %248 = vmatmul.msk.f32.vlgmr.msra.gmra.mxu0 %vm90_vm1, %v85_v8  ;;  %v185_v39 = vld [vmem:[#allocation7] sm:$0xff] }
  0x17   :  { %250 = vmatmul.msk.f32.vlgmr.msra.gmra.mxu1 %vm114_vm2, %v80_v9  ;;  %213 = vmatpush.msra.mxu2 %v185_v39  ;;  %v262_v43 = vld [vmem:[%s483_s7] ss:$0 sm:$0xff] }
  0x93   :  { %v111_v11 = vpop.f32.mrf.mxu0 }
  0x94   :  { %v139_v12 = vpop.f32.mrf.mxu1 }
  0x95   :  { %v140_v13 = vadd.f32 %v139_v12, %v111_v11 }
  0x97   :  { %v146_v14 = vadd.f32 %v261_v10, %v140_v13 }
  0x99   :  { %263 = vtanh.f32 %v146_v14  ;;  %v251_v16 = vmul.f32 -1.442695, %v146_v14 }
  0x9b   :  { %265 = vpow2.f32 %v251_v16 }
  0x9f   :  { %v264_v15 = vpop.eup %263 }
  0xa0   :  { %170 = vrot.lane.b32.xlu0 %v264_v15, %s378_s1 }
  0xa1   :  { %v266_v17 = vpop.eup %265 }
  0xa2   :  { %v151_v18 = vadd.f32 1.0, %v266_v17 }
  0xa4   :  { %267 = vrcp.f32 %v151_v18  ;;  %v163_v24 = vand.u32 2147483648, %v151_v18  ;;  %vm157_vm4 = vweird.f32 %v151_v18  ;;  %v161_v25 = vand.u32 2147483647, %v151_v18 }
  0xa6   :  { %v164_v27 = vor.u32 1.1754944e-38, %v163_v24  ;;  %vm162_vm6 = vcmp.eq.f32.partialorder %v161_v25, 8.507059e+37 }
  0xaa   :  { %v268_v19 = vpop.eup %267 }
  0xab   :  { %v153_v20 = vmul.f32 %v268_v19, %v151_v18  ;;  %vm158_vm3 = vweird.f32 %v268_v19 }
  0xac   :  { %vm159_vm5 = vmor %vm157_vm4, %vm158_vm3 }
  0xad   :  { %v154_v21 = vsub.f32 1.0, %v153_v20 }
  0xaf   :  { %v155_v22 = vmul.f32 %v268_v19, %v154_v21 }
  0xb1   :  { %v156_v23 = vadd.f32 %v268_v19, %v155_v22 }
  0xb3   :  { %v160_v26 = vsel %vm159_vm5, %v268_v19, %v156_v23 }
  0xb4   :  { %v165_v29 = vsel %vm162_vm6, %v164_v27, %v160_v26 }
  0xb5   :  { %v168_v32 = vmul.f32 %v165_v29, %v147_v31 }
 0x112   :  { %v171_v28 = vpop.permute.xlu0 %170 }
 0x113   :  { %v173_v30 = vmul.f32 %v171_v28, %v165_v29 }
 0x115   :  { %175 = vrot.lane.b32.xlu0 %v173_v30, %s378_s1 }
 0x187   :  { %v176_v33 = vpop.permute.xlu0 %175 }
 0x188   :  { %v178_v34 = vadd.f32 %v176_v33, %v168_v32 }
 0x18a   :  { %269 = vtanh.f32 %v178_v34  ;;  %218 = vst.msk [vmem:[%s484_s8] sm:$0xff] %vm90_vm1, %v178_v34 }
 0x190   :  { %v270_v35 = vpop.eup %269 }
 0x191   :  { %181 = vrot.lane.b32.xlu1 %v270_v35, %s378_s1 }
 0x203   :  { %v182_v40 = vpop.permute.xlu1 %181 }
 0x204   :  { %v184_v41 = vmul.f32 %v182_v40, %v165_v29 }
 0x206   :  { %194 = vrot.lane.b32.xlu1 %v184_v41, %s379_s0 }
 0x278   :  { %v195_v42 = vpop.permute.xlu1 %194 }
 0x279   :  { %220 = vst.msk [vmem:[%s485_s9] sm:$0xff] %vm90_vm1, %v195_v42  ;;  %252 = vmatmul.msk.f32.vlgmr.msra.gmra.mxu2 %vm90_vm1, %v195_v42 }
 0x2fc   :  { %v215_v44 = vpop.f32.mrf.mxu2 }
 0x2fd   :  { %v216_v45 = vadd.f32 %v262_v43, %v215_v44 }
 0x2ff   :  { %221 = vst [vmem:[#allocation8] sm:$0xff] %v216_v45 }
 0x300   :  { %236 = dma.vmem_to_hbm [thread:$0]  %s232_s19, 128, %s234_s22, [#allocation4]  }
 0x301   :  { %371 = dma.done.wait [#allocation4], 128  }
 0x302   :  { %372 = vsyncadd [#allocation4], 4294967168 }
 0x303   :  { %245 = vsyncpa [#allocation3], 1 }
 0x304   :  { %246 = vsyncpa [#allocation6], 1 }
 0x305   :  { %247 = vsyncpa [#allocation4], 1 }

</bundles_post_ra>
